<compile_context>
chip_gen: v6e
topology: v6e:2x2x1
jax: 0.10.0
libtpu: 0.0.40
codegen_flags: <defaults>
</compile_context>

<pallas_src>
from functools import partial

import jax
import jax.numpy as jnp
from jax.experimental import pallas as pl
from jax.experimental.pallas import tpu as pltpu

# ---------------- model hyper-parameters (args) ----------------
NODE_FEATURE_LEN = 11       # node_feature_length (one-hot element encoding)
ELEMENT_EMBEDDING = 32      # args.element_embedding
HIDDEN = 32                 # args.hidden_encoding (== element_embedding)
MPNN_STEPS = 3              # args.mpnn_steps
# args.mpnn_aggr == 'add' (GatedGraphConv default propagate aggregation)

GATE_W = 3 * HIDDEN         # fused [r|z|n] gate width (96)
GATE_W_PAD = 128            # padded to one full 128-lane vreg
SLAB_W = 2 * GATE_W_PAD     # parameter slab lane width (256): [input-gates | hidden-gates]
G_PAD = 128                 # graph (output lane) axis padding -> unmasked final store

# ---------------- parameter slab row layout ----------------
R_EMB = 0                            # rows [0, 11):   W_emb            (lanes 0:H)
R_STEP = 16                          # rows [16,112):  per-step [H,256] fused GRU weights
R_GBIAS = R_STEP + MPNN_STEPS * HIDDEN   # row 112:    [b_ir+b_hr | b_iz+b_hz | b_in | b_hn]
R_W1 = 120                           # rows [120,152): W1               (lanes 0:H)
R_B1 = R_W1 + HIDDEN                 # row 152:        b1               (lanes 0:H)
R_W2 = R_B1 + 1                      # row 153:        W2^T row         (lanes 0:H)
R_B2 = R_W2 + 1                      # row 154:        b2 broadcast     (lanes 0:G_PAD)
R_TOTAL = 160


def _softplus(x):
    # torch.nn.Softplus(beta=1, threshold=20); written with log/exp only (Mosaic-safe).
    return jnp.where(x > 20.0, x, jnp.log(1.0 + jnp.exp(jnp.minimum(x, 20.0))))


def bonding_graph_gnn_kernel(x_ref, idx_ref, p_ref, out_ref):
    f32 = jnp.float32
    H = HIDDEN
    N, F = x_ref.shape            # nodes, raw feature length
    L = idx_ref.shape[1]          # padded edge/node lane count (>= max(E, N), mult of 128)
    G = out_ref.shape[1]          # padded graph count (128)

    # ---- EmbeddingBlock: ReLU(x @ W_emb), no bias -----------------------------------
    w_emb = p_ref[R_EMB:R_EMB + F, 0:H]                                    # [F, H]
    h = jnp.maximum(jnp.dot(x_ref[...], w_emb, preferred_element_type=f32), 0.0)  # [N, H]

    # ---- dense adjacency built on the MXU from edge_index ---------------------------
    # A[dst, src] += 1 for every edge  ==  onehot(dst) @ onehot(src)^T
    # (padded edge slots carry src=dst=N which matches no node -> contribute zero).
    node_iota = jax.lax.broadcasted_iota(jnp.int32, (N, L), 0)
    oh_src = (idx_ref[0:1, :] == node_iota).astype(f32)                    # [N, L]
    oh_dst = (idx_ref[1:2, :] == node_iota).astype(f32)                    # [N, L]
    adj = jax.lax.dot_general(oh_dst, oh_src, (((1,), (1,)), ((), ())),
                              preferred_element_type=f32)                  # [N, N]

    # ---- fused GRU gate biases (loaded once) -----------------------------------------
    gb = p_ref[R_GBIAS:R_GBIAS + 1, 0:GATE_W_PAD]                          # [1, 128]
    b_rz = gb[:, 0:2 * H]
    b_in = gb[:, 2 * H:3 * H]
    b_hn = gb[:, 3 * H:4 * H]

    # ---- MPNNBlock: GatedGraphConv(aggr='add'), unrolled; 2 MXU dots per step --------
    #   hw = h @ [ W_ggc[t]@[Wir|Wiz|Win]  |  [Whr|Whz|Whn] ]   (one 256-lane dot)
    #   gi = adj @ hw[:, :128]     (propagation folded into the input-gate weights)
    #   gh = hw[:, 128:256]
    # Slices below rebase each 32-lane gate chunk to lanes 0:32 once; the remaining
    # cross-chunk combines are XLU filler under the MXU dependency chain.
    for t in range(MPNN_STEPS):
        w_step = p_ref[R_STEP + t * H:R_STEP + (t + 1) * H, :]             # [H, 256]
        hw = jnp.dot(h, w_step, preferred_element_type=f32)                # [N, 256]
        gi = jnp.dot(adj, hw[:, 0:GATE_W_PAD], preferred_element_type=f32)  # [N, 128]
        gh = hw[:, GATE_W_PAD:2 * GATE_W_PAD]                              # [N, 128]
        rz = jax.nn.sigmoid(gi[:, 0:2 * H] + gh[:, 0:2 * H] + b_rz)
        r = rz[:, 0:H]
        z = rz[:, H:2 * H]
        n = jnp.tanh(gi[:, 2 * H:3 * H] + b_in + r * (gh[:, 2 * H:3 * H] + b_hn))
        h = (1.0 - z) * n + z * h

    h = jnp.maximum(h, 0.0)                                                # ReLU after MPNN

    # ---- global_mean_pool from `batch` (graphs on sublanes here) ---------------------
    # batch row is padded with -1 beyond N -> never matches a graph id.
    g_iota = jax.lax.broadcasted_iota(jnp.int32, (G, L), 0)
    mask_g = (idx_ref[2:3, :] == g_iota).astype(f32)                       # [G, L]
    counts = jnp.sum(mask_g, axis=1, keepdims=True)                        # [G, 1]
    pooled = jnp.dot(mask_g[:, 0:N], h, preferred_element_type=f32)        # [G, H] (sums)
    pooled = pooled / jnp.maximum(counts, 1.0)                             # mean pool

    # ---- OutputBlock; last dot is rhs-transposed so graphs land on the lane axis -----
    w1 = p_ref[R_W1:R_W1 + H, 0:H]                                         # [H, H]
    b1 = p_ref[R_B1:R_B1 + 1, 0:H]                                         # [1, H]
    w2 = p_ref[R_W2:R_W2 + 1, 0:H]                                         # [1, H] = W2^T
    b2 = p_ref[R_B2:R_B2 + 1, 0:G]                                         # [1, G]
    o = jnp.maximum(jnp.dot(pooled, w1, preferred_element_type=f32) + b1, 0.0)   # [G, H]
    y = jax.lax.dot_general(w2, o, (((1,), (1,)), ((), ())),
                            preferred_element_type=f32) + b2               # [1, G]
    out_ref[...] = _softplus(y)                                            # unmasked (1,128) store


def fuse_params(params):
    """Pack all 20 raw parameters into one lane-dense f32 slab [R_TOTAL, 256]."""
    H, T = HIDDEN, MPNN_STEPS
    hi = jax.lax.Precision.HIGHEST
    w_i = jnp.concatenate([params["w_ir"], params["w_iz"], params["w_in"]], axis=1)  # [H, 3H]
    w_h = jnp.concatenate([params["w_hr"], params["w_hz"], params["w_hn"]], axis=1)  # [H, 3H]
    # Fold the per-step propagation weight into the fused input-gate weight (associativity).
    w_fold = jnp.einsum("thk,kj->thj", params["w_ggc"], w_i, precision=hi)           # [T, H, 3H]

    slab = jnp.zeros((R_TOTAL, SLAB_W), jnp.float32)
    slab = slab.at[R_EMB:R_EMB + NODE_FEATURE_LEN, 0:H].set(params["w_emb"])
    for t in range(T):
        r0 = R_STEP + t * H
        slab = slab.at[r0:r0 + H, 0:GATE_W].set(w_fold[t])
        slab = slab.at[r0:r0 + H, GATE_W_PAD:GATE_W_PAD + GATE_W].set(w_h)
    slab = slab.at[R_GBIAS, 0:H].set((params["b_ir"] + params["b_hr"])[0])
    slab = slab.at[R_GBIAS, H:2 * H].set((params["b_iz"] + params["b_hz"])[0])
    slab = slab.at[R_GBIAS, 2 * H:3 * H].set(params["b_in"][0])
    slab = slab.at[R_GBIAS, 3 * H:4 * H].set(params["b_hn"][0])
    slab = slab.at[R_W1:R_W1 + H, 0:H].set(params["w1"])
    slab = slab.at[R_B1, 0:H].set(params["b1"][0])
    slab = slab.at[R_W2, 0:H].set(params["w2"][:, 0])
    slab = slab.at[R_B2, 0:G_PAD].set(jnp.full((G_PAD,), params["b2"][0, 0], jnp.float32))
    return slab


@partial(jax.jit, static_argnames=("n_graphs",))
def bonding_graph_gnn(x, edge_index, batch, param_slab, *, n_graphs):
    """Pads inputs into 3 operands and runs the single fused kernel (gridless)."""
    n_nodes = x.shape[0]
    n_edges = edge_index.shape[1]
    assert n_graphs <= G_PAD, "add a graph-block grid axis for >128 graphs per call"
    lanes = max(128, -(-max(n_edges, n_nodes) // 128) * 128)

    # int32 index slab: row0=src / row1=dst (padded with n_nodes -> matches no node),
    # row2=batch (padded with -1 -> matches no graph).
    idx = jnp.full((3, lanes), -1, jnp.int32)
    idx = idx.at[0:2, :].set(n_nodes)
    idx = idx.at[0:2, :n_edges].set(edge_index.astype(jnp.int32))
    idx = idx.at[2, :n_nodes].set(batch.astype(jnp.int32))

    vmem = pl.BlockSpec(memory_space=pltpu.MemorySpace.VMEM)
    out = pl.pallas_call(
        bonding_graph_gnn_kernel,
        out_shape=jax.ShapeDtypeStruct((1, G_PAD), jnp.float32),
        in_specs=[vmem, vmem, vmem],
        out_specs=vmem,
    )(x.astype(jnp.float32), idx, param_slab)
    return out[0, :n_graphs]                       # lane-dense (1, G_PAD) -> (n_graphs,)


def make_params(key):
    def draw(key, shape, scale=0.1):
        return scale * jax.random.normal(key, shape, dtype=jnp.float32)

    keys = jax.random.split(key, 20)
    H = HIDDEN
    return {
        "w_emb": draw(keys[0], (NODE_FEATURE_LEN, ELEMENT_EMBEDDING)),
        "w_ggc": draw(keys[1], (MPNN_STEPS, H, H)),
        "w_ir": draw(keys[2], (H, H)), "w_iz": draw(keys[3], (H, H)),
        "w_in": draw(keys[4], (H, H)), "w_hr": draw(keys[5], (H, H)),
        "w_hz": draw(keys[6], (H, H)), "w_hn": draw(keys[7], (H, H)),
        "b_ir": draw(keys[8], (1, H)), "b_iz": draw(keys[9], (1, H)),
        "b_in": draw(keys[10], (1, H)), "b_hr": draw(keys[11], (1, H)),
        "b_hz": draw(keys[12], (1, H)), "b_hn": draw(keys[13], (1, H)),
        "w1": draw(keys[14], (H, H)), "b1": draw(keys[15], (1, H)),
        "w2": draw(keys[16], (H, 1)), "b2": draw(keys[17], (1, 1)),
    }


def reference_forward(x, edge_index, batch, params, n_graphs):
    """Pure-JAX reference with the original (unfused) computation order."""
    with jax.default_matmul_precision("highest"):
        n_nodes = x.shape[0]
        adj = jnp.zeros((n_nodes, n_nodes), jnp.float32).at[
            edge_index[1], edge_index[0]].add(1.0)
        h = jnp.maximum(x @ params["w_emb"], 0.0)
        for t in range(MPNN_STEPS):
            m = h @ params["w_ggc"][t]
            agg = adj @ m
            r = jax.nn.sigmoid(agg @ params["w_ir"] + params["b_ir"]
                               + h @ params["w_hr"] + params["b_hr"])
            z = jax.nn.sigmoid(agg @ params["w_iz"] + params["b_iz"]
                               + h @ params["w_hz"] + params["b_hz"])
            n = jnp.tanh(agg @ params["w_in"] + params["b_in"]
                         + r * (h @ params["w_hn"] + params["b_hn"]))
            h = (1.0 - z) * n + z * h
        h = jnp.maximum(h, 0.0)
        onehot = (batch[None, :] == jnp.arange(n_graphs)[:, None]).astype(jnp.float32)
        pooled = (onehot / jnp.sum(onehot, axis=1, keepdims=True)) @ h
        o = jnp.maximum(pooled @ params["w1"] + params["b1"], 0.0)
        y = o @ params["w2"] + params["b2"]
        return _softplus(y)[:, 0]


if __name__ == "__main__":
    key = jax.random.PRNGKey(0)
    k_param, k_x = jax.random.split(key)

    n_nodes = 16          # 2 graphs x 8 nodes
    n_graphs = 2
    # One-hot node features [N, node_feature_length]
    elem_ids = jax.random.randint(k_x, (n_nodes,), 0, NODE_FEATURE_LEN)
    x = jax.nn.one_hot(elem_ids, NODE_FEATURE_LEN, dtype=jnp.float32)

    # Bidirectional chain edges within each of the two graphs.
    src, dst = [], []
    for base in (0, 8):
        for i in range(7):
            src += [base + i, base + i + 1]
            dst += [base + i + 1, base + i]
    edge_index = jnp.array([src, dst], dtype=jnp.int32)   # [2, E], row0=src, row1=dst
    batch = jnp.array([0] * 8 + [1] * 8, dtype=jnp.int32)

    params = make_params(k_param)
    param_slab = fuse_params(params)

    out = bonding_graph_gnn(x, edge_index, batch, param_slab, n_graphs=n_graphs)
    out = jax.block_until_ready(out)

    ref = reference_forward(x, edge_index, batch, params, n_graphs)
    assert out.shape == (n_graphs,)
    assert jnp.allclose(out, ref, atol=1e-4, rtol=1e-4), (out, ref)

    print("KERNEL_OK")
</pallas_src>

<mosaic_0001>
module attributes {stable_mosaic.version = 11 : i64} {
  func.func @bonding_graph_gnn_kernel(%arg0: memref<16x11xf32, #tpu.memory_space<vmem>>, %arg1: memref<3x128xi32, #tpu.memory_space<vmem>>, %arg2: memref<160x256xf32, #tpu.memory_space<vmem>>, %arg3: memref<1x128xf32, #tpu.memory_space<vmem>>) attributes {dimension_semantics = [], scalar_prefetch = 0 : i64, scratch_operands = 0 : i64, tpu.core_type = #tpu.core_type<tc>} {
    %c0 = arith.constant 0 : index
    %c0_0 = arith.constant 0 : index
    %0 = vector.load %arg2[%c0, %c0_0] : memref<160x256xf32, #tpu.memory_space<vmem>>, vector<11x32xf32>
    %c0_1 = arith.constant 0 : index
    %c0_2 = arith.constant 0 : index
    %1 = vector.load %arg0[%c0_1, %c0_2] : memref<16x11xf32, #tpu.memory_space<vmem>>, vector<16x11xf32>
    %cst = arith.constant dense<0.000000e+00> : vector<16x32xf32>
    %2 = tpu.matmul %1, %0, %cst {dimension_numbers = #tpu.dot_dimension_numbers<[1], [0], [0], [1], [0, 0, 1, 1], [], []>} : vector<16x11xf32>, vector<11x32xf32>, vector<16x32xf32> -> vector<16x32xf32>
    %cst_3 = arith.constant 0.000000e+00 : f32
    %3 = vector.broadcast %cst_3 : f32 to vector<16x32xf32>
    %4 = arith.maximumf %2, %3 : vector<16x32xf32>
    %5 = tpu.iota {dimensions = array<i32: 0>} : vector<16x128xi32>
    %c0_4 = arith.constant 0 : index
    %c0_5 = arith.constant 0 : index
    %6 = vector.load %arg1[%c0_4, %c0_5] : memref<3x128xi32, #tpu.memory_space<vmem>>, vector<1x128xi32>
    %7 = vector.broadcast %6 : vector<1x128xi32> to vector<16x128xi32>
    %8 = arith.cmpi eq, %7, %5 : vector<16x128xi32>
    %9 = arith.extui %8 : vector<16x128xi1> to vector<16x128xi32>
    %10 = arith.sitofp %9 : vector<16x128xi32> to vector<16x128xf32>
    %c1 = arith.constant 1 : index
    %c0_6 = arith.constant 0 : index
    %11 = vector.load %arg1[%c1, %c0_6] : memref<3x128xi32, #tpu.memory_space<vmem>>, vector<1x128xi32>
    %12 = vector.broadcast %11 : vector<1x128xi32> to vector<16x128xi32>
    %13 = arith.cmpi eq, %12, %5 : vector<16x128xi32>
    %14 = arith.extui %13 : vector<16x128xi1> to vector<16x128xi32>
    %15 = arith.sitofp %14 : vector<16x128xi32> to vector<16x128xf32>
    %cst_7 = arith.constant dense<0.000000e+00> : vector<16x16xf32>
    %16 = tpu.matmul %15, %10, %cst_7 {dimension_numbers = #tpu.dot_dimension_numbers<[1], [1], [0], [0], [0, 0, 1, 0], [], []>} : vector<16x128xf32>, vector<16x128xf32>, vector<16x16xf32> -> vector<16x16xf32>
    %c112 = arith.constant 112 : index
    %c0_8 = arith.constant 0 : index
    %17 = vector.load %arg2[%c112, %c0_8] : memref<160x256xf32, #tpu.memory_space<vmem>>, vector<1x128xf32>
    %18 = vector.extract_strided_slice %17 {offsets = [0, 0], sizes = [1, 64], strides = [1, 1]} : vector<1x128xf32> to vector<1x64xf32>
    %19 = vector.extract_strided_slice %17 {offsets = [0, 64], sizes = [1, 32], strides = [1, 1]} : vector<1x128xf32> to vector<1x32xf32>
    %20 = vector.extract_strided_slice %17 {offsets = [0, 96], sizes = [1, 32], strides = [1, 1]} : vector<1x128xf32> to vector<1x32xf32>
    %c16 = arith.constant 16 : index
    %c0_9 = arith.constant 0 : index
    %21 = vector.load %arg2[%c16, %c0_9] : memref<160x256xf32, #tpu.memory_space<vmem>>, vector<32x256xf32>
    %cst_10 = arith.constant dense<0.000000e+00> : vector<16x256xf32>
    %22 = tpu.matmul %4, %21, %cst_10 {dimension_numbers = #tpu.dot_dimension_numbers<[1], [0], [0], [1], [0, 0, 1, 1], [], []>} : vector<16x32xf32>, vector<32x256xf32>, vector<16x256xf32> -> vector<16x256xf32>
    %23 = vector.extract_strided_slice %22 {offsets = [0, 0], sizes = [16, 128], strides = [1, 1]} : vector<16x256xf32> to vector<16x128xf32>
    %cst_11 = arith.constant dense<0.000000e+00> : vector<16x128xf32>
    %24 = tpu.matmul %16, %23, %cst_11 {dimension_numbers = #tpu.dot_dimension_numbers<[1], [0], [0], [1], [0, 0, 1, 1], [], []>} : vector<16x16xf32>, vector<16x128xf32>, vector<16x128xf32> -> vector<16x128xf32>
    %25 = vector.extract_strided_slice %22 {offsets = [0, 128], sizes = [16, 128], strides = [1, 1]} : vector<16x256xf32> to vector<16x128xf32>
    %26 = vector.extract_strided_slice %24 {offsets = [0, 0], sizes = [16, 64], strides = [1, 1]} : vector<16x128xf32> to vector<16x64xf32>
    %27 = vector.extract_strided_slice %25 {offsets = [0, 0], sizes = [16, 64], strides = [1, 1]} : vector<16x128xf32> to vector<16x64xf32>
    %28 = arith.addf %26, %27 : vector<16x64xf32>
    %29 = vector.broadcast %18 : vector<1x64xf32> to vector<16x64xf32>
    %30 = arith.addf %28, %29 : vector<16x64xf32>
    %31 = arith.negf %30 : vector<16x64xf32>
    %32 = math.exp %31 : vector<16x64xf32>
    %cst_12 = arith.constant 1.000000e+00 : f32
    %33 = vector.broadcast %cst_12 : f32 to vector<16x64xf32>
    %34 = arith.addf %33, %32 : vector<16x64xf32>
    %35 = arith.divf %33, %34 : vector<16x64xf32>
    %36 = vector.extract_strided_slice %35 {offsets = [0, 0], sizes = [16, 32], strides = [1, 1]} : vector<16x64xf32> to vector<16x32xf32>
    %37 = vector.extract_strided_slice %35 {offsets = [0, 32], sizes = [16, 32], strides = [1, 1]} : vector<16x64xf32> to vector<16x32xf32>
    %38 = vector.extract_strided_slice %24 {offsets = [0, 64], sizes = [16, 32], strides = [1, 1]} : vector<16x128xf32> to vector<16x32xf32>
    %39 = vector.broadcast %19 : vector<1x32xf32> to vector<16x32xf32>
    %40 = arith.addf %38, %39 : vector<16x32xf32>
    %41 = vector.extract_strided_slice %25 {offsets = [0, 64], sizes = [16, 32], strides = [1, 1]} : vector<16x128xf32> to vector<16x32xf32>
    %42 = vector.broadcast %20 : vector<1x32xf32> to vector<16x32xf32>
    %43 = arith.addf %41, %42 : vector<16x32xf32>
    %44 = arith.mulf %36, %43 : vector<16x32xf32>
    %45 = arith.addf %40, %44 : vector<16x32xf32>
    %46 = math.tanh %45 : vector<16x32xf32>
    %cst_13 = arith.constant 1.000000e+00 : f32
    %47 = vector.broadcast %cst_13 : f32 to vector<16x32xf32>
    %48 = arith.subf %47, %37 : vector<16x32xf32>
    %49 = arith.mulf %48, %46 : vector<16x32xf32>
    %50 = arith.mulf %37, %4 : vector<16x32xf32>
    %51 = arith.addf %49, %50 : vector<16x32xf32>
    %c48 = arith.constant 48 : index
    %c0_14 = arith.constant 0 : index
    %52 = vector.load %arg2[%c48, %c0_14] : memref<160x256xf32, #tpu.memory_space<vmem>>, vector<32x256xf32>
    %cst_15 = arith.constant dense<0.000000e+00> : vector<16x256xf32>
    %53 = tpu.matmul %51, %52, %cst_15 {dimension_numbers = #tpu.dot_dimension_numbers<[1], [0], [0], [1], [0, 0, 1, 1], [], []>} : vector<16x32xf32>, vector<32x256xf32>, vector<16x256xf32> -> vector<16x256xf32>
    %54 = vector.extract_strided_slice %53 {offsets = [0, 0], sizes = [16, 128], strides = [1, 1]} : vector<16x256xf32> to vector<16x128xf32>
    %cst_16 = arith.constant dense<0.000000e+00> : vector<16x128xf32>
    %55 = tpu.matmul %16, %54, %cst_16 {dimension_numbers = #tpu.dot_dimension_numbers<[1], [0], [0], [1], [0, 0, 1, 1], [], []>} : vector<16x16xf32>, vector<16x128xf32>, vector<16x128xf32> -> vector<16x128xf32>
    %56 = vector.extract_strided_slice %53 {offsets = [0, 128], sizes = [16, 128], strides = [1, 1]} : vector<16x256xf32> to vector<16x128xf32>
    %57 = vector.extract_strided_slice %55 {offsets = [0, 0], sizes = [16, 64], strides = [1, 1]} : vector<16x128xf32> to vector<16x64xf32>
    %58 = vector.extract_strided_slice %56 {offsets = [0, 0], sizes = [16, 64], strides = [1, 1]} : vector<16x128xf32> to vector<16x64xf32>
    %59 = arith.addf %57, %58 : vector<16x64xf32>
    %60 = vector.broadcast %18 : vector<1x64xf32> to vector<16x64xf32>
    %61 = arith.addf %59, %60 : vector<16x64xf32>
    %62 = arith.negf %61 : vector<16x64xf32>
    %63 = math.exp %62 : vector<16x64xf32>
    %cst_17 = arith.constant 1.000000e+00 : f32
    %64 = vector.broadcast %cst_17 : f32 to vector<16x64xf32>
    %65 = arith.addf %64, %63 : vector<16x64xf32>
    %66 = arith.divf %64, %65 : vector<16x64xf32>
    %67 = vector.extract_strided_slice %66 {offsets = [0, 0], sizes = [16, 32], strides = [1, 1]} : vector<16x64xf32> to vector<16x32xf32>
    %68 = vector.extract_strided_slice %66 {offsets = [0, 32], sizes = [16, 32], strides = [1, 1]} : vector<16x64xf32> to vector<16x32xf32>
    %69 = vector.extract_strided_slice %55 {offsets = [0, 64], sizes = [16, 32], strides = [1, 1]} : vector<16x128xf32> to vector<16x32xf32>
    %70 = vector.broadcast %19 : vector<1x32xf32> to vector<16x32xf32>
    %71 = arith.addf %69, %70 : vector<16x32xf32>
    %72 = vector.extract_strided_slice %56 {offsets = [0, 64], sizes = [16, 32], strides = [1, 1]} : vector<16x128xf32> to vector<16x32xf32>
    %73 = vector.broadcast %20 : vector<1x32xf32> to vector<16x32xf32>
    %74 = arith.addf %72, %73 : vector<16x32xf32>
    %75 = arith.mulf %67, %74 : vector<16x32xf32>
    %76 = arith.addf %71, %75 : vector<16x32xf32>
    %77 = math.tanh %76 : vector<16x32xf32>
    %cst_18 = arith.constant 1.000000e+00 : f32
    %78 = vector.broadcast %cst_18 : f32 to vector<16x32xf32>
    %79 = arith.subf %78, %68 : vector<16x32xf32>
    %80 = arith.mulf %79, %77 : vector<16x32xf32>
    %81 = arith.mulf %68, %51 : vector<16x32xf32>
    %82 = arith.addf %80, %81 : vector<16x32xf32>
    %c80 = arith.constant 80 : index
    %c0_19 = arith.constant 0 : index
    %83 = vector.load %arg2[%c80, %c0_19] : memref<160x256xf32, #tpu.memory_space<vmem>>, vector<32x256xf32>
    %cst_20 = arith.constant dense<0.000000e+00> : vector<16x256xf32>
    %84 = tpu.matmul %82, %83, %cst_20 {dimension_numbers = #tpu.dot_dimension_numbers<[1], [0], [0], [1], [0, 0, 1, 1], [], []>} : vector<16x32xf32>, vector<32x256xf32>, vector<16x256xf32> -> vector<16x256xf32>
    %85 = vector.extract_strided_slice %84 {offsets = [0, 0], sizes = [16, 128], strides = [1, 1]} : vector<16x256xf32> to vector<16x128xf32>
    %cst_21 = arith.constant dense<0.000000e+00> : vector<16x128xf32>
    %86 = tpu.matmul %16, %85, %cst_21 {dimension_numbers = #tpu.dot_dimension_numbers<[1], [0], [0], [1], [0, 0, 1, 1], [], []>} : vector<16x16xf32>, vector<16x128xf32>, vector<16x128xf32> -> vector<16x128xf32>
    %87 = vector.extract_strided_slice %84 {offsets = [0, 128], sizes = [16, 128], strides = [1, 1]} : vector<16x256xf32> to vector<16x128xf32>
    %88 = vector.extract_strided_slice %86 {offsets = [0, 0], sizes = [16, 64], strides = [1, 1]} : vector<16x128xf32> to vector<16x64xf32>
    %89 = vector.extract_strided_slice %87 {offsets = [0, 0], sizes = [16, 64], strides = [1, 1]} : vector<16x128xf32> to vector<16x64xf32>
    %90 = arith.addf %88, %89 : vector<16x64xf32>
    %91 = vector.broadcast %18 : vector<1x64xf32> to vector<16x64xf32>
    %92 = arith.addf %90, %91 : vector<16x64xf32>
    %93 = arith.negf %92 : vector<16x64xf32>
    %94 = math.exp %93 : vector<16x64xf32>
    %cst_22 = arith.constant 1.000000e+00 : f32
    %95 = vector.broadcast %cst_22 : f32 to vector<16x64xf32>
    %96 = arith.addf %95, %94 : vector<16x64xf32>
    %97 = arith.divf %95, %96 : vector<16x64xf32>
    %98 = vector.extract_strided_slice %97 {offsets = [0, 0], sizes = [16, 32], strides = [1, 1]} : vector<16x64xf32> to vector<16x32xf32>
    %99 = vector.extract_strided_slice %97 {offsets = [0, 32], sizes = [16, 32], strides = [1, 1]} : vector<16x64xf32> to vector<16x32xf32>
    %100 = vector.extract_strided_slice %86 {offsets = [0, 64], sizes = [16, 32], strides = [1, 1]} : vector<16x128xf32> to vector<16x32xf32>
    %101 = vector.broadcast %19 : vector<1x32xf32> to vector<16x32xf32>
    %102 = arith.addf %100, %101 : vector<16x32xf32>
    %103 = vector.extract_strided_slice %87 {offsets = [0, 64], sizes = [16, 32], strides = [1, 1]} : vector<16x128xf32> to vector<16x32xf32>
    %104 = vector.broadcast %20 : vector<1x32xf32> to vector<16x32xf32>
    %105 = arith.addf %103, %104 : vector<16x32xf32>
    %106 = arith.mulf %98, %105 : vector<16x32xf32>
    %107 = arith.addf %102, %106 : vector<16x32xf32>
    %108 = math.tanh %107 : vector<16x32xf32>
    %cst_23 = arith.constant 1.000000e+00 : f32
    %109 = vector.broadcast %cst_23 : f32 to vector<16x32xf32>
    %110 = arith.subf %109, %99 : vector<16x32xf32>
    %111 = arith.mulf %110, %108 : vector<16x32xf32>
    %112 = arith.mulf %99, %82 : vector<16x32xf32>
    %113 = arith.addf %111, %112 : vector<16x32xf32>
    %cst_24 = arith.constant 0.000000e+00 : f32
    %114 = vector.broadcast %cst_24 : f32 to vector<16x32xf32>
    %115 = arith.maximumf %113, %114 : vector<16x32xf32>
    %116 = tpu.iota {dimensions = array<i32: 0>} : vector<128x128xi32>
    %c2 = arith.constant 2 : index
    %c0_25 = arith.constant 0 : index
    %117 = vector.load %arg1[%c2, %c0_25] : memref<3x128xi32, #tpu.memory_space<vmem>>, vector<1x128xi32>
    %118 = vector.broadcast %117 : vector<1x128xi32> to vector<128x128xi32>
    %119 = arith.cmpi eq, %118, %116 : vector<128x128xi32>
    %120 = arith.extui %119 : vector<128x128xi1> to vector<128x128xi32>
    %121 = arith.sitofp %120 : vector<128x128xi32> to vector<128x128xf32>
    %cst_26 = arith.constant dense<0.000000e+00> : vector<128xf32>
    %122 = vector.multi_reduction <add>, %121, %cst_26 [1] : vector<128x128xf32> to vector<128xf32>
    %123 = vector.shape_cast %122 : vector<128xf32> to vector<128x1xf32>
    %124 = vector.extract_strided_slice %121 {offsets = [0, 0], sizes = [128, 16], strides = [1, 1]} : vector<128x128xf32> to vector<128x16xf32>
    %cst_27 = arith.constant dense<0.000000e+00> : vector<128x32xf32>
    %125 = tpu.matmul %124, %115, %cst_27 {dimension_numbers = #tpu.dot_dimension_numbers<[1], [0], [0], [1], [0, 0, 1, 1], [], []>} : vector<128x16xf32>, vector<16x32xf32>, vector<128x32xf32> -> vector<128x32xf32>
    %cst_28 = arith.constant 1.000000e+00 : f32
    %126 = vector.broadcast %cst_28 : f32 to vector<128x1xf32>
    %127 = arith.maximumf %123, %126 : vector<128x1xf32>
    %128 = vector.broadcast %127 : vector<128x1xf32> to vector<128x32xf32>
    %129 = arith.divf %125, %128 : vector<128x32xf32>
    %c120 = arith.constant 120 : index
    %c0_29 = arith.constant 0 : index
    %130 = vector.load %arg2[%c120, %c0_29] : memref<160x256xf32, #tpu.memory_space<vmem>>, vector<32x32xf32>
    %c152 = arith.constant 152 : index
    %c0_30 = arith.constant 0 : index
    %131 = vector.load %arg2[%c152, %c0_30] : memref<160x256xf32, #tpu.memory_space<vmem>>, vector<1x32xf32>
    %c153 = arith.constant 153 : index
    %c0_31 = arith.constant 0 : index
    %132 = vector.load %arg2[%c153, %c0_31] : memref<160x256xf32, #tpu.memory_space<vmem>>, vector<1x32xf32>
    %c154 = arith.constant 154 : index
    %c0_32 = arith.constant 0 : index
    %133 = vector.load %arg2[%c154, %c0_32] : memref<160x256xf32, #tpu.memory_space<vmem>>, vector<1x128xf32>
    %cst_33 = arith.constant dense<0.000000e+00> : vector<128x32xf32>
    %134 = tpu.matmul %129, %130, %cst_33 {dimension_numbers = #tpu.dot_dimension_numbers<[1], [0], [0], [1], [0, 0, 1, 1], [], []>} : vector<128x32xf32>, vector<32x32xf32>, vector<128x32xf32> -> vector<128x32xf32>
    %135 = vector.broadcast %131 : vector<1x32xf32> to vector<128x32xf32>
    %136 = arith.addf %134, %135 : vector<128x32xf32>
    %cst_34 = arith.constant 0.000000e+00 : f32
    %137 = vector.broadcast %cst_34 : f32 to vector<128x32xf32>
    %138 = arith.maximumf %136, %137 : vector<128x32xf32>
    %cst_35 = arith.constant dense<0.000000e+00> : vector<1x128xf32>
    %139 = tpu.matmul %132, %138, %cst_35 {dimension_numbers = #tpu.dot_dimension_numbers<[1], [1], [0], [0], [0, 0, 1, 0], [], []>} : vector<1x32xf32>, vector<128x32xf32>, vector<1x128xf32> -> vector<1x128xf32>
    %140 = arith.addf %139, %133 : vector<1x128xf32>
    %cst_36 = arith.constant 2.000000e+01 : f32
    %141 = vector.broadcast %cst_36 : f32 to vector<1x128xf32>
    %142 = arith.cmpf ogt, %140, %141 : vector<1x128xf32>
    %cst_37 = arith.constant 2.000000e+01 : f32
    %143 = vector.broadcast %cst_37 : f32 to vector<1x128xf32>
    %144 = arith.minimumf %140, %143 : vector<1x128xf32>
    %145 = math.exp %144 : vector<1x128xf32>
    %cst_38 = arith.constant 1.000000e+00 : f32
    %146 = vector.broadcast %cst_38 : f32 to vector<1x128xf32>
    %147 = arith.addf %146, %145 : vector<1x128xf32>
    %148 = math.log %147 : vector<1x128xf32>
    %149 = arith.select %142, %140, %148 : vector<1x128xi1>, vector<1x128xf32>
    %c0_39 = arith.constant 0 : index
    %c0_40 = arith.constant 0 : index
    %150 = vector.load %arg3[%c0_39, %c0_40] : memref<1x128xf32, #tpu.memory_space<vmem>>, vector<1x128xf32>
    tpu.vector_store %arg3[%c0_39, %c0_40], %149 {strides = array<i32>} : memref<1x128xf32, #tpu.memory_space<vmem>>, vector<1x128xf32>,
    return
  }
}

</mosaic_0001>

<bundles_post_ra>
// kernel: bonding_graph_gnn.1
= control target key start
LH: loop header
LB: loop body
LE: loop exit
PB: predicated region body
PF: predicated region fallthrough
CT: control target
= control target key end

     0   :  { %8 = vsyncpa [#allocation3], 0  ;;  %s2351_s0 = inlined_call_operand.hbm [shape: f32[16,11], index: 0, kind: input, shape index: {}]   ;;  %s2352_s1 = inlined_call_operand.vmem [shape: s32[3,128], index: 1, kind: input, shape index: {}]   ;;  %s2353_s2 = inlined_call_operand.hbm [shape: f32[160,256], index: 2, kind: input, shape index: {}]   ;;  %s2354_s3 = inlined_call_operand.vmem [shape: f32[1,128], index: 3, kind: output, shape index: {}]  }
   0x1   :  { %9 = vsyncpa [#allocation5], 0  ;;  %s2065_s12 = smov [#allocation2]  }
   0x2   :  { %s15_s13 = sshll.u32 %s2065_s12, 4  ;;  %s16_s13 = int_to_ptr.vmem [resolvable:$true] %s15_s13 }
   0x3   :  { %s2029_s14 = scalar_lea.vmem %s16_s13, 256  ;;  %p2034_p1 = scmp.lt.s32.totalorder %s16_s13, %s16_s13 }
   0x4   :  { %p2030_p0 = scmp.ne.s32.totalorder %s16_s13, %s2029_s14  ;;  %p2035_p2 = scmp.lt.s32.totalorder %s2029_s14, %s2029_s14 }
   0x6   :  { %p2036_p3 = por %p2035_p2, %p2034_p1 }
   0x8   :  { %p2037_p4 = pnand %p2036_p3, %p2030_p0 }
   0xa   :  { %2040 = shalt.err (!%p2037_p4)
}
   0xb   :  { %s2066_s15 = smov 128   ;;  %s2067_s16 = smov 8  }
   0xc   :  { %21 = dma.hbm_to_vmem [thread:$0]  %s2351_s0, 256, %s16_s13, [#allocation3], %s2066_s15, %s2066_s15, %s2067_s16  }
   0xd   :  { %s2068_s19 = smov [#allocation4]  }
   0xe   :  { %s29_s20 = sshll.u32 %s2068_s19, 4  ;;  %s30_s20 = int_to_ptr.vmem [resolvable:$true] %s29_s20 }
   0xf   :  { %s2049_s21 = scalar_lea.vmem %s30_s20, 5120  ;;  %p2054_p6 = scmp.lt.s32.totalorder %s30_s20, %s30_s20 }
  0x10   :  { %p2050_p5 = scmp.ne.s32.totalorder %s30_s20, %s2049_s21  ;;  %p2055_p7 = scmp.lt.s32.totalorder %s2049_s21, %s2049_s21 }
  0x12   :  { %p2056_p8 = por %p2055_p7, %p2054_p6 }
  0x14   :  { %p2057_p9 = pnand %p2056_p8, %p2050_p5 }
  0x16   :  { %2060 = shalt.err (!%p2057_p9)
}
  0x17   :  { %s2069_s22 = smov 256   ;;  %s2070_s23 = smov 16  }
  0x18   :  { %35 = dma.hbm_to_vmem [thread:$0]  %s2353_s2, 5120, %s30_s20, [#allocation5], %s2069_s22, %s2069_s22, %s2070_s23  }
  0x19   :  { %2061 = dma.done.wait [#allocation3], 256  }
  0x1a   :  { %2062 = vsyncadd [#allocation3], 4294967040 }
  0x1b   :  { %2063 = dma.done.wait [#allocation5], 5120  }
  0x1c   :  { %2064 = vsyncadd [#allocation5], 4294962176  ;;  %v134_v0 = vlaneseq  ;;  %vm53_vm0 = vcmask 1042432   ;;  %vm46_vm1 = vcmask 89088   ;;  %v43_v3 = vld [vmem:[#allocation4 + $0x10] sm:$0x7] }
  0x1d   :  { %v42_v4 = vld [vmem:[#allocation4] sm:$0xff]  ;;  %v44_v5 = vld [vmem:[#allocation2] sm:$0xff]  ;;  %1807 = vmatprep.subr.msk.mxu1 %vm53_vm0, %v43_v3  ;;  %v45_v8 = vld [vmem:[#allocation2 + $0x8] sm:$0xff]  ;;  %v2071_v9 = vmov 1.0   ;;  %v2072_v18 = vmov 0.0   ;;  %s2073_s28 = smov 96  }
  0x1e   :  { %v2103_v1 = vshrl.u32 %v134_v0, 7  ;;  %1811 = vmatprep.mubr.msk.f32.mxu1 %vm46_vm1, %v44_v5  ;;  %v1638_v6 = vld [vmem:[%s2352_s1] ss:$0 sm:$0xff]  ;;  %v1641_v7 = vld [vmem:[%s2352_s1 + $0x1] ss:$0 sm:$0xff]  ;;  %1808 = vmatpush3.msk.msra.mxu1 %vm53_vm0, %v43_v3  ;;  %v242_v10 = vld [vmem:[#allocation4 + $0x58] sm:$0xff] }
  0x1f   :  { %1809 = vmatprep.subr.mxu1 %v42_v4  ;;  %v241_v11 = vld [vmem:[#allocation4 + $0x50] sm:$0xff]  ;;  %v240_v12 = vld [vmem:[#allocation4 + $0x48] sm:$0xff]  ;;  %v239_v13 = vld [vmem:[#allocation4 + $0x40] sm:$0xff]  ;;  %559 = vmatprep.mubr.f32.mxu0 %v2072_v18  ;;  %vm243_vm6 = vcmask 261120   ;;  %vm327_vm7 = vcmask 130048   ;;  %s2074_s29 = smov 64  }
  0x20   :  { %v2106_v2 = vadd.s32 8, %v2103_v1  ;;  %vm153_vm3 = vcmp.eq.s32.totalorder %v1641_v7, %v2103_v1  ;;  %1810 = vmatpush3.msra.mxu1 %v42_v4  ;;  %vm142_vm4 = vcmp.eq.s32.totalorder %v1638_v6, %v2103_v1  ;;  %v238_v14 = vld [vmem:[#allocation4 + $0x38] sm:$0xff]  ;;  %v237_v15 = vld [vmem:[#allocation4 + $0x30] sm:$0xff]  ;;  %v236_v16 = vld [vmem:[#allocation4 + $0x28] sm:$0xff]  ;;  %s2075_s30 = smov 32  }
  0x21   :  { %1812 = vmatmul.mubr.msk.f32.vlgmr.msra.gmra.mxu1 %vm46_vm1, %v45_v8  ;;  %v235_v17 = vld [vmem:[#allocation4 + $0x20] sm:$0xff]  ;;  %v484_v57 = vld [vmem:[#allocation4 + $0x98] sm:$0xff]  ;;  %v483_v58 = vld [vmem:[#allocation4 + $0x90] sm:$0xff] }
  0x22   :  { %vm143_vm2 = vcmp.eq.s32.totalorder %v1638_v6, %v2106_v2  ;;  %1818 = vmatprep.mubr.msk.f32.mxu1 %vm153_vm3, %v2071_v9  ;;  %vm154_vm5 = vcmp.eq.s32.totalorder %v1641_v7, %v2106_v2  ;;  %v2122_v19 = vld [vmem:[#allocation4 + $0xe0] ss:$0 sm:$0xff]  ;;  %v482_v59 = vld [vmem:[#allocation4 + $0x88] sm:$0xff]  ;;  %519 = vmatprep.subr.mxu0 %v484_v57  ;;  %v480_v61 = vld [vmem:[#allocation4 + $0x78] sm:$0xff] }
  0x23   :  { %1814 = vmatprep.subr.msk.mxu1 %vm143_vm2, %v2071_v9  ;;  %428 = vrot.lane.b32.xlu0 %v2122_v19, %s2073_s28  ;;  %v481_v60 = vld [vmem:[#allocation4 + $0x80] sm:$0xff]  ;;  %v479_v62 = vld [vmem:[#allocation4 + $0x70] sm:$0xff]  ;;  %v478_v0 = vld [vmem:[#allocation4 + $0x68] sm:$0xff] }
  0x24   :  { %1815 = vmatpush3.xpose.msk.msra.mxu1 %vm143_vm2, %v2071_v9  ;;  %520 = vmatpush1.msra.mxu0 %v483_v58  ;;  %v477_v3 = vld [vmem:[#allocation4 + $0x60] sm:$0xff]  ;;  %v708_v57 = vld [vmem:[#allocation4 + $0xb8] sm:$0xff]  ;;  %v707_v58 = vld [vmem:[#allocation4 + $0xb0] sm:$0xff] }
  0x25   :  { %1816 = vmatprep.subr.msk.mxu1 %vm142_vm4, %v2071_v9  ;;  %521 = vmatprep.subr.mxu0 %v482_v59 }
  0x26   :  { %522 = vmatpush1.msra.mxu0 %v481_v60 }
  0x27   :  { %523 = vmatprep.subr.mxu0 %v480_v61  ;;  %v706_v61 = vld [vmem:[#allocation4 + $0xa8] sm:$0xff] }
  0x28   :  { %1817 = vmatpush3.xpose.msk.msra.mxu1 %vm142_vm4, %v2071_v9  ;;  %524 = vmatpush1.msra.mxu0 %v479_v62  ;;  %v705_v62 = vld [vmem:[#allocation4 + $0xa0] sm:$0xff] }
  0x29   :  { %274 = vmatprep.subr.mxu1 %v242_v10  ;;  %525 = vmatprep.subr.mxu0 %v478_v0 }
  0x2a   :  { %526 = vmatpush1.msra.mxu0 %v477_v3 }
  0x2b   :  { %1819 = vmatmul.mubr.msk.f32.vlgmr.msra.gmra.mxu1 %vm154_vm5, %v2071_v9 }
  0x2c   :  { %275 = vmatpush1.msra.mxu1 %v241_v11  ;;  %314 = vmatprep.mubr.f32.mxu1 %v2072_v18 }
  0x2d   :  { %276 = vmatprep.subr.mxu1 %v240_v12 }
  0x2e   :  { %277 = vmatpush1.msra.mxu1 %v239_v13 }
  0x2f   :  { %278 = vmatprep.subr.mxu1 %v238_v14 }
  0x30   :  { %279 = vmatpush1.msra.mxu1 %v237_v15 }
  0x31   :  { %280 = vmatprep.subr.mxu1 %v236_v16 }
  0x32   :  { %281 = vmatpush1.msra.mxu1 %v235_v17 }
  0x95   :  { %v2135_v27 = vpop.permute.xlu0 %428 }
  0xe1   :  { %v1813_v20 = vpop.f32.mrf.mxu1 }
  0xe2   :  { %v133_v23 = vmax.f32 %v1813_v20, 0.0 }
  0xe3   :  { %v123_v21 = vpop.f32.mrf.mxu1 }
  0xe4   :  { %v132_v22 = vmax.f32 %v123_v21, 0.0 }
  0xe6   :  { %1648 = vmatmul.mubr.msk.f32.vlgmr.msra.gmra.mxu1 %vm243_vm6, %v132_v22 }
  0xe7   :  { %320 = vmatprep.mubr.f32.mxu1 %v2072_v18 }
  0xea   :  { %1649 = vmatmul.mubr.msk.f32.gmra.mxu1 %vm243_vm6, %v133_v23 }
  0xeb   :  { %v2128_v24 = vpop.f32.mrf.mxu1 }
  0xed   :  { %v2131_v25 = vpop.f32.mrf.mxu1 }
  0xee   :  { %1825 = vmatprep.mubr.msk.f32.mxu1 %vm327_vm7, %v2131_v25 }
 0x1a6   :  { %v316_v26 = vpop.f32.mrf.mxu1 }
 0x1a8   :  { %v318_v28 = vpop.f32.mrf.mxu1 }
 0x1a9   :  { %v431_v29 = vadd.f32 %v2135_v27, %v318_v28 }
 0x1aa   :  { %v322_v30 = vpop.f32.mrf.mxu1 }
 0x1ab   :  { %435 = vrot.lane.b32.xlu0 %v431_v29, %s2074_s29  ;;  %1821 = vmatprep.subr.mxu1 %v322_v30 }
 0x1ac   :  { %v324_v31 = vpop.f32.mrf.mxu1  ;;  %1822 = vmatpush3.msra.mxu1 %v322_v30 }
 0x1ad   :  { %1823 = vmatprep.subr.mxu1 %v316_v26  ;;  %v432_v32 = vadd.f32 %v2135_v27, %v324_v31 }
 0x1ae   :  { %1824 = vmatpush3.msra.mxu1 %v316_v26 }
 0x1af   :  { %1826 = vmatmul.mubr.msk.f32.vlgmr.msra.gmra.mxu1 %vm327_vm7, %v2128_v24  ;;  %437 = vrot.lane.b32.xlu1 %v432_v32, %s2074_s29 }
 0x1b0   :  { %1832 = vmatprep.mubr.msk.f32.mxu1 %vm327_vm7, %v2131_v25 }
 0x21d   :  { %v436_v49 = vpop.permute.xlu0 %435 }
 0x221   :  { %v438_v46 = vpop.permute.xlu1 %437 }
 0x26f   :  { %v1827_v33 = vpop.f32.mrf.mxu1 }
 0x270   :  { %v410_v34 = vadd.f32 %v1827_v33, %v324_v31  ;;  %v426_v54 = vadd.f32 %v1827_v33, %v2122_v19 }
 0x271   :  { %v400_v35 = vpop.f32.mrf.mxu1 }
 0x272   :  { %v412_v36 = vadd.f32 %v410_v34, %v2122_v19  ;;  %v409_v37 = vadd.f32 %v400_v35, %v318_v28  ;;  %v425_v51 = vadd.f32 %v400_v35, %v2122_v19 }
 0x274   :  { %v1653_v38 = vmul.f32 -1.442695, %v412_v36  ;;  %v411_v39 = vadd.f32 %v409_v37, %v2122_v19 }
 0x276   :  { %1949 = vpow2.f32 %v1653_v38  ;;  %v1652_v40 = vmul.f32 -1.442695, %v411_v39 }
 0x278   :  { %1951 = vpow2.f32 %v1652_v40 }
 0x283   :  { %v1950_v41 = vpop.eup %1949 }
 0x284   :  { %v420_v42 = vadd.f32 1.0, %v1950_v41 }
 0x285   :  { %v1952_v43 = vpop.eup %1951 }
 0x286   :  { %1953 = vrcp.f32 %v420_v42  ;;  %v419_v44 = vadd.f32 1.0, %v1952_v43 }
 0x288   :  { %1955 = vrcp.f32 %v419_v44 }
 0x293   :  { %v1954_v45 = vpop.eup %1953 }
 0x294   :  { %v442_v47 = vmul.f32 %v1954_v45, %v438_v46  ;;  %v456_v12 = vsub.f32 1.0, %v1954_v45 }
 0x295   :  { %v1956_v48 = vpop.eup %1955 }
 0x296   :  { %447 = vrot.lane.b32.xlu0 %v442_v47, %s2074_s29  ;;  %v441_v50 = vmul.f32 %v1956_v48, %v436_v49  ;;  %v455_v6 = vsub.f32 1.0, %v1956_v48 }
 0x298   :  { %445 = vrot.lane.b32.xlu1 %v441_v50, %s2074_s29 }
 0x29a   :  { %467 = vrot.lane.b32.xlu0 %v132_v22, %s2075_s30 }
 0x29e   :  { %469 = vrot.lane.b32.xlu0 %v133_v23, %s2075_s30 }
 0x308   :  { %v448_v52 = vpop.permute.xlu0 %447 }
 0x309   :  { %v452_v56 = vadd.f32 %v448_v52, %v426_v54  ;;  %v711_v54 = vld [vmem:[#allocation4 + $0xd0] sm:$0xff] }
 0x30a   :  { %v446_v53 = vpop.permute.xlu1 %445 }
 0x30b   :  { %v451_v55 = vadd.f32 %v446_v53, %v425_v51  ;;  %v712_v53 = vld [vmem:[#allocation4 + $0xd8] sm:$0xff] }
 0x30c   :  { %v468_v5 = vpop.permute.xlu0 %467 }
 0x30d   :  { %1957 = vtanh.f32 %v451_v55  ;;  %v473_v8 = vmul.f32 %v1956_v48, %v468_v5  ;;  %v710_v55 = vld [vmem:[#allocation4 + $0xc8] sm:$0xff] }
 0x30e   :  { %1959 = vtanh.f32 %v452_v56  ;;  %v709_v56 = vld [vmem:[#allocation4 + $0xc0] sm:$0xff] }
 0x310   :  { %v470_v10 = vpop.permute.xlu0 %469 }
 0x311   :  { %v474_v14 = vmul.f32 %v1954_v45, %v470_v10 }
 0x31a   :  { %v1958_v63 = vpop.eup %1957 }
 0x31b   :  { %459 = vrot.lane.b32.xlu1 %v1958_v63, %s2073_s28  ;;  %v1960_v4 = vpop.eup %1959 }
 0x31f   :  { %461 = vrot.lane.b32.xlu1 %v1960_v4, %s2073_s28 }
 0x38d   :  { %v460_v7 = vpop.permute.xlu1 %459 }
 0x38e   :  { %v465_v9 = vmul.f32 %v460_v7, %v455_v6 }
 0x390   :  { %v2153_v11 = vadd.f32 %v473_v8, %v465_v9 }
 0x391   :  { %v462_v13 = vpop.permute.xlu1 %461 }
 0x392   :  { %v466_v15 = vmul.f32 %v462_v13, %v456_v12  ;;  %487 = vrot.lane.b32.xlu1 %v2153_v11, %s2073_s28 }
 0x394   :  { %v2157_v16 = vadd.f32 %v474_v14, %v466_v15 }
 0x396   :  { %489 = vrot.lane.b32.xlu0 %v2157_v16, %s2073_s28 }
 0x404   :  { %v488_v17 = vpop.permute.xlu1 %487 }
 0x405   :  { %1654 = vmatmul.mubr.msk.f32.vlgmr.msra.gmra.mxu0 %vm243_vm6, %v488_v17 }
 0x406   :  { %565 = vmatprep.mubr.f32.mxu0 %v2072_v18 }
 0x408   :  { %v490_v20 = vpop.permute.xlu0 %489 }
 0x409   :  { %1655 = vmatmul.mubr.msk.f32.gmra.mxu0 %vm243_vm6, %v490_v20 }
 0x40a   :  { %1839 = vmatprep.mubr.msk.f32.mxu0 %vm327_vm7, %v2131_v25 }
 0x4c5   :  { %v561_v21 = vpop.f32.mrf.mxu0 }
 0x4c7   :  { %v563_v22 = vpop.f32.mrf.mxu0 }
 0x4c8   :  { %v665_v23 = vadd.f32 %v563_v22, %v2135_v27 }
 0x4c9   :  { %v567_v26 = vpop.f32.mrf.mxu0 }
 0x4ca   :  { %669 = vrot.lane.b32.xlu1 %v665_v23, %s2074_s29  ;;  %1828 = vmatprep.subr.mxu1 %v567_v26 }
 0x4cb   :  { %v569_v28 = vpop.f32.mrf.mxu0  ;;  %1829 = vmatpush3.msra.mxu1 %v567_v26 }
 0x4cc   :  { %v666_v29 = vadd.f32 %v569_v28, %v2135_v27  ;;  %1830 = vmatprep.subr.mxu1 %v561_v21 }
 0x4cd   :  { %1831 = vmatpush3.msra.mxu1 %v561_v21 }
 0x4ce   :  { %1833 = vmatmul.mubr.msk.f32.vlgmr.msra.gmra.mxu1 %vm327_vm7, %v2128_v24  ;;  %671 = vrot.lane.b32.xlu0 %v666_v29, %s2074_s29 }
 0x4cf   :  { %787 = vmatprep.mubr.f32.mxu1 %v2072_v18  ;;  %747 = vmatprep.subr.mxu1 %v712_v53 }
 0x4d0   :  { %748 = vmatpush1.msra.mxu1 %v711_v54 }
 0x4d1   :  { %749 = vmatprep.subr.mxu1 %v710_v55 }
 0x4d2   :  { %750 = vmatpush1.msra.mxu1 %v709_v56 }
 0x4d3   :  { %751 = vmatprep.subr.mxu1 %v708_v57 }
 0x4d4   :  { %752 = vmatpush1.msra.mxu1 %v707_v58 }
 0x4d5   :  { %753 = vmatprep.subr.mxu1 %v706_v61 }
 0x4d6   :  { %754 = vmatpush1.msra.mxu1 %v705_v62  ;;  %v936_v62 = vadd.s32 24, %v2103_v1 }
 0x53c   :  { %v670_v45 = vpop.permute.xlu1 %669 }
 0x540   :  { %v672_v42 = vpop.permute.xlu0 %671 }
 0x58e   :  { %v1834_v25 = vpop.f32.mrf.mxu1 }
 0x58f   :  { %v648_v30 = vadd.f32 %v1834_v25, %v569_v28  ;;  %v664_v47 = vadd.f32 %v1834_v25, %v2122_v19 }
 0x590   :  { %v638_v31 = vpop.f32.mrf.mxu1 }
 0x591   :  { %v650_v32 = vadd.f32 %v648_v30, %v2122_v19  ;;  %v647_v33 = vadd.f32 %v638_v31, %v563_v22  ;;  %v663_v49 = vadd.f32 %v638_v31, %v2122_v19 }
 0x593   :  { %v1659_v34 = vmul.f32 -1.442695, %v650_v32  ;;  %v649_v35 = vadd.f32 %v647_v33, %v2122_v19 }
 0x595   :  { %1961 = vpow2.f32 %v1659_v34  ;;  %v1658_v36 = vmul.f32 -1.442695, %v649_v35 }
 0x597   :  { %1963 = vpow2.f32 %v1658_v36 }
 0x5a2   :  { %v1962_v37 = vpop.eup %1961 }
 0x5a3   :  { %v658_v38 = vadd.f32 1.0, %v1962_v37 }
 0x5a4   :  { %v1964_v39 = vpop.eup %1963 }
 0x5a5   :  { %1965 = vrcp.f32 %v658_v38  ;;  %v657_v40 = vadd.f32 1.0, %v1964_v39 }
 0x5a7   :  { %1967 = vrcp.f32 %v657_v40 }
 0x5b2   :  { %v1966_v41 = vpop.eup %1965 }
 0x5b3   :  { %v676_v43 = vmul.f32 %v1966_v41, %v672_v42  ;;  %v690_v63 = vsub.f32 1.0, %v1966_v41  ;;  %v702_v3 = vmul.f32 %v1966_v41, %v2157_v16 }
 0x5b4   :  { %v1968_v44 = vpop.eup %1967 }
 0x5b5   :  { %681 = vrot.lane.b32.xlu0 %v676_v43, %s2074_s29  ;;  %v675_v46 = vmul.f32 %v1968_v44, %v670_v45  ;;  %v689_v5 = vsub.f32 1.0, %v1968_v44  ;;  %v701_v8 = vmul.f32 %v1968_v44, %v2153_v11 }
 0x5b7   :  { %679 = vrot.lane.b32.xlu1 %v675_v46, %s2074_s29 }
 0x627   :  { %v682_v48 = vpop.permute.xlu0 %681 }
 0x628   :  { %v686_v50 = vadd.f32 %v682_v48, %v664_v47  ;;  %v2211_v47 = vld [vmem:[%s2352_s1 + $0x2] ss:$0 sm:$0xff] }
 0x629   :  { %v680_v51 = vpop.permute.xlu1 %679  ;;  %vm954_vm8 = vcmp.eq.s32.totalorder %v2211_v47, %v2103_v1  ;;  %vm955_vm9 = vcmp.eq.s32.totalorder %v2211_v47, %v2106_v2  ;;  %vm957_vm11 = vcmp.eq.s32.totalorder %v2211_v47, %v936_v62  ;;  %v938_v2 = vadd.s32 40, %v2103_v1 }
 0x62a   :  { %1969 = vtanh.f32 %v686_v50  ;;  %v685_v52 = vadd.f32 %v680_v51, %v663_v49  ;;  %v2225_v61 = vsel %vm955_vm9, 1.0, %v2072_v18 }
 0x62b   :  { %vm959_vm13 = vcmp.eq.s32.totalorder %v2211_v47, %v938_v2 }
 0x62c   :  { %1971 = vtanh.f32 %v685_v52 }
 0x637   :  { %v1970_v59 = vpop.eup %1969 }
 0x638   :  { %695 = vrot.lane.b32.xlu0 %v1970_v59, %s2073_s28 }
 0x639   :  { %v1972_v60 = vpop.eup %1971 }
 0x63a   :  { %693 = vrot.lane.b32.xlu1 %v1972_v60, %s2073_s28  ;;  %v935_v60 = vadd.s32 16, %v2103_v1 }
 0x63c   :  { %vm956_vm10 = vcmp.eq.s32.totalorder %v2211_v47, %v935_v60 }
 0x6aa   :  { %v696_v0 = vpop.permute.xlu0 %695 }
 0x6ab   :  { %v700_v4 = vmul.f32 %v696_v0, %v690_v63  ;;  %v937_v63 = vadd.s32 32, %v2103_v1  ;;  %v2232_v0 = vsel %vm956_vm10, 1.0, %v2072_v18 }
 0x6ac   :  { %v694_v6 = vpop.permute.xlu1 %693 }
 0x6ad   :  { %v2182_v7 = vadd.f32 %v702_v3, %v700_v4  ;;  %v699_v9 = vmul.f32 %v694_v6, %v689_v5  ;;  %vm958_vm12 = vcmp.eq.s32.totalorder %v2211_v47, %v937_v63  ;;  %v939_v3 = vadd.s32 48, %v2103_v1 }
 0x6ae   :  { %v1670_v4 = vsel %vm957_vm11, 1.0, %v2072_v18  ;;  %v1671_v5 = vsel %vm958_vm12, 1.0, %v2072_v18  ;;  %v940_v6 = vadd.s32 56, %v2103_v1 }
 0x6af   :  { %v2185_v10 = vadd.f32 %v701_v8, %v699_v9  ;;  %717 = vrot.lane.b32.xlu0 %v2182_v7, %s2073_s28  ;;  %vm960_vm14 = vcmp.eq.s32.totalorder %v2211_v47, %v939_v3  ;;  %v1672_v8 = vsel %vm959_vm13, 1.0, %v2072_v18 }
 0x6b0   :  { %v1673_v9 = vsel %vm960_vm14, 1.0, %v2072_v18  ;;  %vm961_vm15 = vcmp.eq.s32.totalorder %v2211_v47, %v940_v6 }
 0x6b1   :  { %715 = vrot.lane.b32.xlu1 %v2185_v10, %s2073_s28 }
 0x721   :  { %v718_v13 = vpop.permute.xlu0 %717 }
 0x723   :  { %v716_v12 = vpop.permute.xlu1 %715 }
 0x724   :  { %1660 = vmatmul.mubr.msk.f32.vlgmr.msra.gmra.mxu1 %vm243_vm6, %v716_v12  ;;  %v943_v12 = vadd.s32 80, %v2103_v1 }
 0x725   :  { %793 = vmatprep.mubr.f32.mxu1 %v2072_v18 }
 0x726   :  { %vm964_vm2 = vcmp.eq.s32.totalorder %v2211_v47, %v943_v12 }
 0x728   :  { %1661 = vmatmul.mubr.msk.f32.gmra.mxu1 %vm243_vm6, %v718_v13  ;;  %v1674_v13 = vsel %vm961_vm15, 1.0, %v2072_v18 }
 0x7e4   :  { %v789_v14 = vpop.f32.mrf.mxu1 }
 0x7e6   :  { %v791_v15 = vpop.f32.mrf.mxu1 }
 0x7e7   :  { %v893_v11 = vadd.f32 %v791_v15, %v2135_v27 }
 0x7e8   :  { %v795_v16 = vpop.f32.mrf.mxu1 }
 0x7e9   :  { %897 = vrot.lane.b32.xlu0 %v893_v11, %s2074_s29  ;;  %1835 = vmatprep.subr.mxu0 %v795_v16  ;;  %v945_v11 = vadd.s32 96, %v2103_v1 }
 0x7ea   :  { %v797_v17 = vpop.f32.mrf.mxu1  ;;  %1836 = vmatpush3.msra.mxu0 %v795_v16 }
 0x7eb   :  { %v894_v20 = vadd.f32 %v797_v17, %v2135_v27  ;;  %1837 = vmatprep.subr.mxu0 %v789_v14  ;;  %vm966_vm4 = vcmp.eq.s32.totalorder %v2211_v47, %v945_v11 }
 0x7ec   :  { %1838 = vmatpush3.msra.mxu0 %v789_v14 }
 0x7ed   :  { %1840 = vmatmul.mubr.msk.f32.vlgmr.msra.gmra.mxu0 %vm327_vm7, %v2128_v24  ;;  %899 = vrot.lane.b32.xlu1 %v894_v20, %s2074_s29  ;;  %v946_v20 = vadd.s32 104, %v2103_v1 }
 0x7ef   :  { %vm967_vm5 = vcmp.eq.s32.totalorder %v2211_v47, %v946_v20 }
 0x85b   :  { %v898_v37 = vpop.permute.xlu0 %897 }
 0x85f   :  { %v900_v34 = vpop.permute.xlu1 %899 }
 0x8ad   :  { %v1841_v21 = vpop.f32.mrf.mxu0 }
 0x8ae   :  { %v876_v22 = vadd.f32 %v1841_v21, %v797_v17  ;;  %v892_v39 = vadd.f32 %v1841_v21, %v2122_v19  ;;  %v1677_v17 = vsel %vm964_vm2, 1.0, %v2072_v18  ;;  %v947_v21 = vadd.s32 112, %v2103_v1 }
 0x8af   :  { %v866_v23 = vpop.f32.mrf.mxu0 }
 0x8b0   :  { %v878_v26 = vadd.f32 %v876_v22, %v2122_v19  ;;  %v875_v28 = vadd.f32 %v866_v23, %v791_v15  ;;  %v891_v41 = vadd.f32 %v866_v23, %v2122_v19  ;;  %v944_v15 = vadd.s32 88, %v2103_v1 }
 0x8b1   :  { %v1679_v23 = vsel %vm966_vm4, 1.0, %v2072_v18 }
 0x8b2   :  { %v1665_v29 = vmul.f32 -1.442695, %v878_v26  ;;  %v877_v25 = vadd.f32 %v875_v28, %v2122_v19  ;;  %v1667_v19 = vsel %vm954_vm8, 1.0, %v2072_v18  ;;  %vm965_vm3 = vcmp.eq.s32.totalorder %v2211_v47, %v944_v15  ;;  %v1286_v28 = vld [vmem:[#allocation4 + $0x120] sm:$0xff] }
 0x8b3   :  { %1846 = vmatprep.mubr.msk.f32.mxu0 %vm327_vm7, %v1667_v19  ;;  %v1678_v22 = vsel %vm965_vm3, 1.0, %v2072_v18  ;;  %v948_v26 = vadd.s32 120, %v2103_v1  ;;  %vm968_vm8 = vcmp.eq.s32.totalorder %v2211_v47, %v947_v21  ;;  %1870 = vmatprep.subr.mxu1 %v1286_v28 }
 0x8b4   :  { %1973 = vpow2.f32 %v1665_v29  ;;  %v1664_v30 = vmul.f32 -1.442695, %v877_v25  ;;  %1871 = vmatpush3.msra.mxu1 %v1286_v28  ;;  %v1680_v29 = vsel %vm967_vm5, 1.0, %v2072_v18  ;;  %v1681_v25 = vsel %vm968_vm8, 1.0, %v2072_v18 }
 0x8b5   :  { %vm969_vm9 = vcmp.eq.s32.totalorder %v2211_v47, %v948_v26 }
 0x8b6   :  { %1975 = vpow2.f32 %v1664_v30  ;;  %v1682_v30 = vsel %vm969_vm9, 1.0, %v2072_v18 }
 0x8c1   :  { %v1974_v27 = vpop.eup %1973 }
 0x8c2   :  { %v886_v31 = vadd.f32 1.0, %v1974_v27 }
 0x8c3   :  { %v1976_v32 = vpop.eup %1975 }
 0x8c4   :  { %1977 = vrcp.f32 %v886_v31  ;;  %v885_v33 = vadd.f32 1.0, %v1976_v32  ;;  %v1285_v31 = vld [vmem:[#allocation4 + $0x110] sm:$0xff]  ;;  %v1284_v32 = vld [vmem:[#allocation4 + $0x100] sm:$0xff] }
 0x8c5   :  { %1872 = vmatprep.subr.mxu1 %v1285_v31 }
 0x8c6   :  { %1979 = vrcp.f32 %v885_v33  ;;  %1873 = vmatpush3.msra.mxu1 %v1285_v31  ;;  %v1283_v33 = vld [vmem:[#allocation4 + $0xf0] sm:$0xff] }
 0x8c7   :  { %1874 = vmatprep.subr.mxu1 %v1284_v32 }
 0x8c8   :  { %1875 = vmatpush3.msra.mxu1 %v1284_v32 }
 0x8c9   :  { %1876 = vmatprep.subr.mxu1 %v1283_v33 }
 0x8ca   :  { %1877 = vmatpush3.msra.mxu1 %v1283_v33 }
 0x8d1   :  { %v1978_v24 = vpop.eup %1977 }
 0x8d2   :  { %v904_v35 = vmul.f32 %v1978_v24, %v900_v34  ;;  %v918_v48 = vsub.f32 1.0, %v1978_v24  ;;  %v930_v50 = vmul.f32 %v1978_v24, %v2182_v7  ;;  %v941_v7 = vadd.s32 64, %v2103_v1 }
 0x8d3   :  { %v1980_v36 = vpop.eup %1979 }
 0x8d4   :  { %909 = vrot.lane.b32.xlu1 %v904_v35, %s2074_s29  ;;  %v903_v38 = vmul.f32 %v1980_v36, %v898_v37  ;;  %v917_v52 = vsub.f32 1.0, %v1980_v36  ;;  %v929_v55 = vmul.f32 %v1980_v36, %v2185_v10  ;;  %v942_v10 = vadd.s32 72, %v2103_v1 }
 0x8d5   :  { %vm962_vm0 = vcmp.eq.s32.totalorder %v2211_v47, %v941_v7 }
 0x8d6   :  { %907 = vrot.lane.b32.xlu0 %v903_v38, %s2074_s29  ;;  %v1675_v14 = vsel %vm962_vm0, 1.0, %v2072_v18  ;;  %vm963_vm1 = vcmp.eq.s32.totalorder %v2211_v47, %v942_v10 }
 0x8d7   :  { %v1676_v16 = vsel %vm963_vm1, 1.0, %v2072_v18 }
 0x946   :  { %v910_v40 = vpop.permute.xlu1 %909 }
 0x947   :  { %v914_v42 = vadd.f32 %v910_v40, %v892_v39 }
 0x948   :  { %v908_v43 = vpop.permute.xlu0 %907 }
 0x949   :  { %1981 = vtanh.f32 %v914_v42  ;;  %v913_v44 = vadd.f32 %v908_v43, %v891_v41 }
 0x94b   :  { %1983 = vtanh.f32 %v913_v44 }
 0x956   :  { %v1982_v45 = vpop.eup %1981 }
 0x957   :  { %923 = vrot.lane.b32.xlu1 %v1982_v45, %s2073_s28 }
 0x958   :  { %v1984_v46 = vpop.eup %1983 }
 0x959   :  { %921 = vrot.lane.b32.xlu0 %v1984_v46, %s2073_s28 }
 0x9c9   :  { %v924_v49 = vpop.permute.xlu1 %923 }
 0x9ca   :  { %v928_v51 = vmul.f32 %v924_v49, %v918_v48 }
 0x9cb   :  { %v922_v53 = vpop.permute.xlu0 %921 }
 0x9cc   :  { %v932_v54 = vadd.f32 %v930_v50, %v928_v51  ;;  %v927_v56 = vmul.f32 %v922_v53, %v917_v52 }
 0x9ce   :  { %v934_v57 = vmax.f32 %v932_v54, 0.0  ;;  %v931_v58 = vadd.f32 %v929_v55, %v927_v56 }
 0x9d0   :  { %v933_v59 = vmax.f32 %v931_v58, 0.0  ;;  %1038 = vrot.lane.b32.xlu1 %v934_v57, %s2073_s28 }
 0x9d2   :  { %1036 = vrot.lane.b32.xlu0 %v933_v59, %s2073_s28 }
 0x9f1   :  { %1004 = vadd.xlane.f32.xlu0 %v2225_v61 }
 0x9f4   :  { %1002 = vadd.xlane.f32.xlu1 %v1667_v19 }
 0x9f5   :  { %1006 = vadd.xlane.f32.xlu0 %v2232_v0 }
 0x9f8   :  { %1008 = vadd.xlane.f32.xlu1 %v1670_v4 }
 0x9f9   :  { %1010 = vadd.xlane.f32.xlu0 %v1671_v5 }
 0x9fc   :  { %1012 = vadd.xlane.f32.xlu1 %v1672_v8 }
 0x9fd   :  { %1014 = vadd.xlane.f32.xlu0 %v1673_v9 }
 0xa00   :  { %1016 = vadd.xlane.f32.xlu1 %v1674_v13 }
 0xa01   :  { %1018 = vadd.xlane.f32.xlu0 %v1675_v14 }
 0xa04   :  { %1020 = vadd.xlane.f32.xlu1 %v1676_v16 }
 0xa05   :  { %1022 = vadd.xlane.f32.xlu0 %v1677_v17 }
 0xa08   :  { %1024 = vadd.xlane.f32.xlu1 %v1678_v22 }
 0xa09   :  { %1026 = vadd.xlane.f32.xlu0 %v1679_v23 }
 0xa0c   :  { %1028 = vadd.xlane.f32.xlu1 %v1680_v29 }
 0xa0d   :  { %1030 = vadd.xlane.f32.xlu0 %v1681_v25 }
 0xa10   :  { %1032 = vadd.xlane.f32.xlu1 %v1682_v30 }
 0xa42   :  { %v1039_v27 = vpop.permute.xlu1 %1038 }
 0xa43   :  { %1842 = vmatprep.subr.mxu0 %v1039_v27 }
 0xa44   :  { %1843 = vmatpush3.msra.mxu0 %v1039_v27  ;;  %v1037_v1 = vpop.permute.xlu0 %1036 }
 0xa45   :  { %1844 = vmatprep.subr.mxu0 %v1037_v1 }
 0xa46   :  { %1845 = vmatpush3.msra.mxu0 %v1037_v1 }
 0xa47   :  { %1847 = vmatmul.mubr.msk.f32.vlgmr.msra.gmra.mxu0 %vm327_vm7, %v2225_v61  ;;  %1902 = vmatprep.subr.mxu0 %v2072_v18 }
 0xa48   :  { %1849 = vmatprep.mubr.msk.f32.mxu0 %vm327_vm7, %v2232_v0 }
 0xa4b   :  { %1850 = vmatmul.mubr.msk.f32.gmra.mxu0 %vm327_vm7, %v1670_v4 }
 0xa4c   :  { %1852 = vmatprep.mubr.msk.f32.mxu0 %vm327_vm7, %v1671_v5 }
 0xa4f   :  { %1853 = vmatmul.mubr.msk.f32.gmra.mxu0 %vm327_vm7, %v1672_v8 }
 0xa50   :  { %1855 = vmatprep.mubr.msk.f32.mxu0 %vm327_vm7, %v1673_v9 }
 0xa53   :  { %1856 = vmatmul.mubr.msk.f32.gmra.mxu0 %vm327_vm7, %v1674_v13 }
 0xa54   :  { %1858 = vmatprep.mubr.msk.f32.mxu0 %vm327_vm7, %v1675_v14 }
 0xa57   :  { %1859 = vmatmul.mubr.msk.f32.gmra.mxu0 %vm327_vm7, %v1676_v16 }
 0xa58   :  { %1861 = vmatprep.mubr.msk.f32.mxu0 %vm327_vm7, %v1677_v17 }
 0xa5b   :  { %1862 = vmatmul.mubr.msk.f32.gmra.mxu0 %vm327_vm7, %v1678_v22 }
 0xa5c   :  { %1864 = vmatprep.mubr.msk.f32.mxu0 %vm327_vm7, %v1679_v23 }
 0xa5f   :  { %1865 = vmatmul.mubr.msk.f32.gmra.mxu0 %vm327_vm7, %v1680_v29 }
 0xa60   :  { %1867 = vmatprep.mubr.msk.f32.mxu0 %vm327_vm7, %v1681_v25 }
 0xa63   :  { %1868 = vmatmul.mubr.msk.f32.gmra.mxu0 %vm327_vm7, %v1682_v30  ;;  %vm2076_vm7 = vmmov 0  }
 0xa64   :  { %1934 = vmatprep.mubr.msk.f32.mxu0 %vm2076_vm7, %v2072_v18 }
 0xa7a   :  { %v1005_v34 = vpop.xlane.xlu0 %1004 }
 0xa7b   :  { %v1236_v40 = vmax.f32 %v1005_v34, 1.0 }
 0xa7d   :  { %v1003_v24 = vpop.xlane.xlu1 %1002 }
 0xa7e   :  { %v1007_v35 = vpop.xlane.xlu0 %1006  ;;  %v1235_v39 = vmax.f32 %v1003_v24, 1.0 }
 0xa7f   :  { %v1237_v43 = vmax.f32 %v1007_v35, 1.0 }
 0xa80   :  { %1985 = vrcp.f32 %v1235_v39 }
 0xa81   :  { %v1009_v36 = vpop.xlane.xlu1 %1008  ;;  %1987 = vrcp.f32 %v1236_v40 }
 0xa82   :  { %v1011_v37 = vpop.xlane.xlu0 %1010  ;;  %v1238_v44 = vmax.f32 %v1009_v36, 1.0  ;;  %1989 = vrcp.f32 %v1237_v43 }
 0xa83   :  { %v1239_v46 = vmax.f32 %v1011_v37, 1.0 }
 0xa84   :  { %1991 = vrcp.f32 %v1238_v44 }
 0xa85   :  { %v1013_v38 = vpop.xlane.xlu1 %1012  ;;  %1993 = vrcp.f32 %v1239_v46 }
 0xa86   :  { %v1015_v41 = vpop.xlane.xlu0 %1014  ;;  %v1240_v19 = vmax.f32 %v1013_v38, 1.0 }
 0xa87   :  { %v1241_v48 = vmax.f32 %v1015_v41, 1.0 }
 0xa88   :  { %1995 = vrcp.f32 %v1240_v19 }
 0xa89   :  { %v1017_v42 = vpop.xlane.xlu1 %1016  ;;  %1997 = vrcp.f32 %v1241_v48 }
 0xa8a   :  { %v1019_v45 = vpop.xlane.xlu0 %1018  ;;  %v1242_v49 = vmax.f32 %v1017_v42, 1.0 }
 0xa8b   :  { %v1243_v52 = vmax.f32 %v1019_v45, 1.0 }
 0xa8c   :  { %1999 = vrcp.f32 %v1242_v49 }
 0xa8d   :  { %v1021_v47 = vpop.xlane.xlu1 %1020  ;;  %v1986_v53 = vpop.eup %1985  ;;  %2001 = vrcp.f32 %v1243_v52 }
 0xa8e   :  { %v1023_v50 = vpop.xlane.xlu0 %1022  ;;  %v1244_v55 = vmax.f32 %v1021_v47, 1.0  ;;  %v1988_v56 = vpop.eup %1987 }
 0xa8f   :  { %v1245_v60 = vmax.f32 %v1023_v50, 1.0  ;;  %v1990_v62 = vpop.eup %1989 }
 0xa90   :  { %2003 = vrcp.f32 %v1244_v55 }
 0xa91   :  { %v1025_v51 = vpop.xlane.xlu1 %1024  ;;  %v1992_v3 = vpop.eup %1991  ;;  %2005 = vrcp.f32 %v1245_v60 }
 0xa92   :  { %v1027_v58 = vpop.xlane.xlu0 %1026  ;;  %v1246_v2 = vmax.f32 %v1025_v51, 1.0  ;;  %v1994_v7 = vpop.eup %1993 }
 0xa93   :  { %v1247_v6 = vmax.f32 %v1027_v58, 1.0 }
 0xa94   :  { %2007 = vrcp.f32 %v1246_v2 }
 0xa95   :  { %v1029_v61 = vpop.xlane.xlu1 %1028  ;;  %v1996_v13 = vpop.eup %1995  ;;  %2009 = vrcp.f32 %v1247_v6 }
 0xa96   :  { %v1248_v10 = vmax.f32 %v1029_v61, 1.0  ;;  %v1031_v12 = vpop.xlane.xlu0 %1030  ;;  %v1998_v17 = vpop.eup %1997 }
 0xa97   :  { %v1249_v16 = vmax.f32 %v1031_v12, 1.0 }
 0xa98   :  { %2011 = vrcp.f32 %v1248_v10 }
 0xa99   :  { %v1033_v14 = vpop.xlane.xlu1 %1032  ;;  %v2000_v23 = vpop.eup %1999  ;;  %2013 = vrcp.f32 %v1249_v16 }
 0xa9a   :  { %v1250_v22 = vmax.f32 %v1033_v14, 1.0  ;;  %v2002_v29 = vpop.eup %2001 }
 0xa9c   :  { %2015 = vrcp.f32 %v1250_v22 }
 0xa9d   :  { %v2004_v27 = vpop.eup %2003 }
 0xa9e   :  { %v2006_v32 = vpop.eup %2005 }
 0xaa1   :  { %v2008_v34 = vpop.eup %2007 }
 0xaa2   :  { %v2010_v37 = vpop.eup %2009 }
 0xaa5   :  { %v2012_v40 = vpop.eup %2011 }
 0xaa6   :  { %v2014_v43 = vpop.eup %2013 }
 0xaa9   :  { %v2016_v46 = vpop.eup %2015 }
 0xb07   :  { %v1848_v54 = vpop.f32.mrf.mxu0 }
 0xb08   :  { %v1254_v63 = vmul.f32 %v1988_v56, %v1848_v54 }
 0xb09   :  { %v1156_v57 = vpop.f32.mrf.mxu0 }
 0xb0a   :  { %v1252_v59 = vmul.f32 %v1986_v53, %v1156_v57 }
 0xb0b   :  { %v1851_v0 = vpop.f32.mrf.mxu0 }
 0xb0c   :  { %1878 = vmatprep.mubr.msk.f32.mxu1 %vm243_vm6, %v1252_v59  ;;  %v1258_v8 = vmul.f32 %v1992_v3, %v1851_v0 }
 0xb0d   :  { %v1166_v4 = vpop.f32.mrf.mxu0  ;;  %1879 = vmatmul.mubr.msk.f32.vlgmr.msra.gmra.mxu1 %vm243_vm6, %v1254_v63  ;;  %v1287_v63 = vld [vmem:[#allocation4 + $0x130] ss:$0 sm:$0xff] }
 0xb0e   :  { %v1256_v5 = vmul.f32 %v1990_v62, %v1166_v4 }
 0xb0f   :  { %v1854_v9 = vpop.f32.mrf.mxu0 }
 0xb10   :  { %1881 = vmatprep.mubr.msk.f32.mxu1 %vm243_vm6, %v1256_v5  ;;  %v1262_v20 = vmul.f32 %v1996_v13, %v1854_v9 }
 0xb11   :  { %v1176_v15 = vpop.f32.mrf.mxu0  ;;  %1882 = vmatmul.mubr.msk.f32.gmra.mxu1 %vm243_vm6, %v1258_v8 }
 0xb12   :  { %v1260_v11 = vmul.f32 %v1994_v7, %v1176_v15 }
 0xb13   :  { %v1857_v21 = vpop.f32.mrf.mxu0 }
 0xb14   :  { %1884 = vmatprep.mubr.msk.f32.mxu1 %vm243_vm6, %v1260_v11  ;;  %v1266_v25 = vmul.f32 %v2000_v23, %v1857_v21 }
 0xb15   :  { %v1186_v26 = vpop.f32.mrf.mxu0  ;;  %1885 = vmatmul.mubr.msk.f32.gmra.mxu1 %vm243_vm6, %v1262_v20 }
 0xb16   :  { %v1264_v28 = vmul.f32 %v1998_v17, %v1186_v26 }
 0xb17   :  { %v1860_v30 = vpop.f32.mrf.mxu0 }
 0xb18   :  { %1887 = vmatprep.mubr.msk.f32.mxu1 %vm243_vm6, %v1264_v28  ;;  %v1270_v33 = vmul.f32 %v2004_v27, %v1860_v30 }
 0xb19   :  { %v1196_v1 = vpop.f32.mrf.mxu0  ;;  %1888 = vmatmul.mubr.msk.f32.gmra.mxu1 %vm243_vm6, %v1266_v25 }
 0xb1a   :  { %v1268_v31 = vmul.f32 %v2002_v29, %v1196_v1 }
 0xb1b   :  { %v1863_v24 = vpop.f32.mrf.mxu0 }
 0xb1c   :  { %1890 = vmatprep.mubr.msk.f32.mxu1 %vm243_vm6, %v1268_v31  ;;  %v1274_v38 = vmul.f32 %v2008_v34, %v1863_v24 }
 0xb1d   :  { %v1206_v35 = vpop.f32.mrf.mxu0  ;;  %1891 = vmatmul.mubr.msk.f32.gmra.mxu1 %vm243_vm6, %v1270_v33 }
 0xb1e   :  { %v1272_v36 = vmul.f32 %v2006_v32, %v1206_v35 }
 0xb1f   :  { %v1866_v39 = vpop.f32.mrf.mxu0 }
 0xb20   :  { %1893 = vmatprep.mubr.msk.f32.mxu1 %vm243_vm6, %v1272_v36  ;;  %v1278_v44 = vmul.f32 %v2012_v40, %v1866_v39  ;;  %v1288_v36 = vld [vmem:[#allocation4 + $0x131] ss:$0 sm:$0xff] }
 0xb21   :  { %v1216_v41 = vpop.f32.mrf.mxu0  ;;  %1894 = vmatmul.mubr.msk.f32.gmra.mxu1 %vm243_vm6, %v1274_v38 }
 0xb22   :  { %v1276_v42 = vmul.f32 %v2010_v37, %v1216_v41  ;;  %v1289_v37 = vld [vmem:[#allocation4 + $0x132] ss:$0 sm:$0xff] }
 0xb23   :  { %v1869_v45 = vpop.f32.mrf.mxu0 }
 0xb24   :  { %1896 = vmatprep.mubr.msk.f32.mxu1 %vm243_vm6, %v1276_v42  ;;  %v1282_v48 = vmul.f32 %v2016_v46, %v1869_v45 }
 0xb25   :  { %v1226_v47 = vpop.f32.mrf.mxu0  ;;  %1897 = vmatmul.mubr.msk.f32.gmra.mxu1 %vm243_vm6, %v1278_v44 }
 0xb26   :  { %v1280_v19 = vmul.f32 %v2014_v43, %v1226_v47 }
 0xb28   :  { %1899 = vmatprep.mubr.msk.f32.mxu1 %vm243_vm6, %v1280_v19 }
 0xb29   :  { %1900 = vmatmul.mubr.msk.f32.gmra.mxu1 %vm243_vm6, %v1282_v48 }
 0xbcd   :  { %v2307_v49 = vpop.f32.mrf.mxu1 }
 0xbce   :  { %v1410_v32 = vadd.f32 %v2307_v49, %v1287_v63 }
 0xbcf   :  { %v2309_v50 = vpop.f32.mrf.mxu1 }
 0xbd0   :  { %v1484_v24 = vmax.f32 %v1410_v32, 0.0  ;;  %v1405_v34 = vadd.f32 %v2309_v50, %v1287_v63 }
 0xbd1   :  { %v1883_v51 = vpop.f32.mrf.mxu1 }
 0xbd2   :  { %v1420_v30 = vadd.f32 %v1883_v51, %v1287_v63  ;;  %v1483_v35 = vmax.f32 %v1405_v34, 0.0 }
 0xbd3   :  { %v2311_v52 = vpop.f32.mrf.mxu1 }
 0xbd4   :  { %v1486_v1 = vmax.f32 %v1420_v30, 0.0  ;;  %v1415_v31 = vadd.f32 %v2311_v52, %v1287_v63 }
 0xbd5   :  { %v1886_v53 = vpop.f32.mrf.mxu1 }
 0xbd6   :  { %v1430_v26 = vadd.f32 %v1886_v53, %v1287_v63  ;;  %v1485_v33 = vmax.f32 %v1415_v31, 0.0 }
 0xbd7   :  { %v1424_v54 = vpop.f32.mrf.mxu1 }
 0xbd8   :  { %v1488_v29 = vmax.f32 %v1430_v26, 0.0  ;;  %v1425_v25 = vadd.f32 %v1424_v54, %v1287_v63 }
 0xbd9   :  { %v1889_v55 = vpop.f32.mrf.mxu1 }
 0xbda   :  { %v1440_v20 = vadd.f32 %v1889_v55, %v1287_v63  ;;  %v1487_v27 = vmax.f32 %v1425_v25, 0.0 }
 0xbdb   :  { %v1434_v56 = vpop.f32.mrf.mxu1 }
 0xbdc   :  { %v1490_v22 = vmax.f32 %v1440_v20, 0.0  ;;  %v1435_v23 = vadd.f32 %v1434_v56, %v1287_v63 }
 0xbdd   :  { %v1892_v57 = vpop.f32.mrf.mxu1 }
 0xbde   :  { %v1450_v15 = vadd.f32 %v1892_v57, %v1287_v63  ;;  %v1489_v28 = vmax.f32 %v1435_v23, 0.0 }
 0xbdf   :  { %v1444_v58 = vpop.f32.mrf.mxu1 }
 0xbe0   :  { %v1492_v16 = vmax.f32 %v1450_v15, 0.0  ;;  %v1445_v17 = vadd.f32 %v1444_v58, %v1287_v63 }
 0xbe1   :  { %v1895_v59 = vpop.f32.mrf.mxu1 }
 0xbe2   :  { %v1460_v10 = vadd.f32 %v1895_v59, %v1287_v63  ;;  %v1491_v21 = vmax.f32 %v1445_v17, 0.0 }
 0xbe3   :  { %v1454_v60 = vpop.f32.mrf.mxu1 }
 0xbe4   :  { %v1494_v13 = vmax.f32 %v1460_v10, 0.0  ;;  %v1455_v14 = vadd.f32 %v1454_v60, %v1287_v63 }
 0xbe5   :  { %v1898_v61 = vpop.f32.mrf.mxu1 }
 0xbe6   :  { %v1470_v6 = vadd.f32 %v1898_v61, %v1287_v63  ;;  %v1493_v11 = vmax.f32 %v1455_v14, 0.0 }
 0xbe7   :  { %v1464_v62 = vpop.f32.mrf.mxu1 }
 0xbe8   :  { %v1496_v8 = vmax.f32 %v1470_v6, 0.0  ;;  %v1465_v9 = vadd.f32 %v1464_v62, %v1287_v63 }
 0xbe9   :  { %v1901_v0 = vpop.f32.mrf.mxu1 }
 0xbea   :  { %v1480_v2 = vadd.f32 %v1901_v0, %v1287_v63  ;;  %v1495_v12 = vmax.f32 %v1465_v9, 0.0 }
 0xbeb   :  { %v1474_v3 = vpop.f32.mrf.mxu1 }
 0xbec   :  { %v1498_v4 = vmax.f32 %v1480_v2, 0.0  ;;  %v1475_v5 = vadd.f32 %v1474_v3, %v1287_v63 }
 0xbee   :  { %1903 = vmatpush3.xpose.msk.msra.mxu0 %vm243_vm6, %v1498_v4  ;;  %v1497_v7 = vmax.f32 %v1475_v5, 0.0 }
 0xbef   :  { %1904 = vmatprep.subr.mxu0 %v2072_v18 }
 0xbf2   :  { %1905 = vmatpush3.xpose.msk.msra.mxu0 %vm243_vm6, %v1497_v7 }
 0xbf3   :  { %1906 = vmatprep.subr.mxu0 %v2072_v18 }
 0xbf6   :  { %1907 = vmatpush3.xpose.msk.msra.mxu0 %vm243_vm6, %v1496_v8 }
 0xbf7   :  { %1908 = vmatprep.subr.mxu0 %v2072_v18 }
 0xbfa   :  { %1909 = vmatpush3.xpose.msk.msra.mxu0 %vm243_vm6, %v1495_v12 }
 0xbfb   :  { %1910 = vmatprep.subr.mxu0 %v2072_v18 }
 0xbfe   :  { %1911 = vmatpush3.xpose.msk.msra.mxu0 %vm243_vm6, %v1494_v13 }
 0xbff   :  { %1912 = vmatprep.subr.mxu0 %v2072_v18 }
 0xc02   :  { %1913 = vmatpush3.xpose.msk.msra.mxu0 %vm243_vm6, %v1493_v11 }
 0xc03   :  { %1914 = vmatprep.subr.mxu0 %v2072_v18 }
 0xc06   :  { %1915 = vmatpush3.xpose.msk.msra.mxu0 %vm243_vm6, %v1492_v16 }
 0xc07   :  { %1916 = vmatprep.subr.mxu0 %v2072_v18 }
 0xc0a   :  { %1917 = vmatpush3.xpose.msk.msra.mxu0 %vm243_vm6, %v1491_v21 }
 0xc0b   :  { %1918 = vmatprep.subr.mxu0 %v2072_v18 }
 0xc0e   :  { %1919 = vmatpush3.xpose.msk.msra.mxu0 %vm243_vm6, %v1490_v22 }
 0xc0f   :  { %1920 = vmatprep.subr.mxu0 %v2072_v18 }
 0xc12   :  { %1921 = vmatpush3.xpose.msk.msra.mxu0 %vm243_vm6, %v1489_v28 }
 0xc13   :  { %1922 = vmatprep.subr.mxu0 %v2072_v18 }
 0xc16   :  { %1923 = vmatpush3.xpose.msk.msra.mxu0 %vm243_vm6, %v1488_v29 }
 0xc17   :  { %1924 = vmatprep.subr.mxu0 %v2072_v18 }
 0xc1a   :  { %1925 = vmatpush3.xpose.msk.msra.mxu0 %vm243_vm6, %v1487_v27 }
 0xc1b   :  { %1926 = vmatprep.subr.mxu0 %v2072_v18 }
 0xc1e   :  { %1927 = vmatpush3.xpose.msk.msra.mxu0 %vm243_vm6, %v1486_v1 }
 0xc1f   :  { %1928 = vmatprep.subr.mxu0 %v2072_v18 }
 0xc22   :  { %1929 = vmatpush3.xpose.msk.msra.mxu0 %vm243_vm6, %v1485_v33 }
 0xc23   :  { %1930 = vmatprep.subr.mxu0 %v2072_v18 }
 0xc26   :  { %1931 = vmatpush3.xpose.msk.msra.mxu0 %vm243_vm6, %v1484_v24 }
 0xc27   :  { %1932 = vmatprep.subr.mxu0 %v2072_v18 }
 0xc2a   :  { %1933 = vmatpush3.xpose.msk.msra.mxu0 %vm243_vm6, %v1483_v35 }
 0xc2d   :  { %1935 = vmatmul.mubr.msk.f32.vlgmr.msra.gmra.mxu0 %vm243_vm6, %v1288_v36 }
 0xced   :  { %v1616_v38 = vpop.f32.mrf.mxu0 }
 0xcee   :  { %v1617_v39 = vadd.f32 %v1616_v38, %v1289_v37 }
 0xcef   :  { %v1936_v40 = vpop.f32.mrf.mxu0 }
 0xcf0   :  { %v1621_v41 = vmin.f32 %v1617_v39, 20.0  ;;  %vm1620_vm10 = vcmp.gt.f32.partialorder %v1617_v39, 20.0 }
 0xcf2   :  { %v1622_v42 = vmul.f32 1.442695, %v1621_v41 }
 0xcf4   :  { %2017 = vpow2.f32 %v1622_v42 }
 0xd01   :  { %v2018_v43 = vpop.eup %2017 }
 0xd02   :  { %v1624_v44 = vadd.f32 1.0, %v2018_v43 }
 0xd04   :  { %2019 = vlog2.f32 %v1624_v44 }
 0xd11   :  { %v2020_v45 = vpop.eup %2019 }
 0xd12   :  { %v1626_v46 = vmul.f32 0.6931472, %v2020_v45 }
 0xd14   :  { %v1627_v18 = vsel %vm1620_vm10, %v1617_v39, %v1626_v46 }
 0xd15   :  { %1628 = vst [vmem:[%s2354_s3] sm:$0x1] %v1627_v18 }
 0xd16   :  { %1633 = vsyncpa [#allocation3], 1 }
 0xd17   :  { %1634 = vsyncpa [#allocation5], 1 }

</bundles_post_ra>
